<compile_context>
chip_gen: v6e
topology: v6e:2x2x1
jax: 0.10.0
libtpu: 0.0.40
codegen_flags: <defaults>
</compile_context>

<pallas_src>
import functools

import jax
import jax.numpy as jnp
from jax import lax
from jax.experimental import pallas as pl
from jax.experimental.pallas import tpu as pltpu

BN_EPS = 1e-4   # matches the PyTorch module's BN_EPS = 0.0001


# ------------------------- Pallas kernel -------------------------

def _ru_kernel(x_ref, w1_ref, b1_ref, w2_ref, b2_ref, o_ref, *, H):
    """Fused RU forward for one row block.

    x_ref : (M, L)     input rows; M = (pairs in block) * H, L = pack*W*C
    w*_ref: (3, L, L)  per-vertical-tap banded weights (folded BN scale baked
                       in, block-diagonal over the lane-packed images)
    b*_ref: (1, L)     folded BN bias, tiled per lane (f32)
    o_ref : (M, L)     output rows
    """
    M, L = x_ref.shape
    x = x_ref[...].astype(jnp.float32)
    cdt = w1_ref.dtype                      # MXU operand dtype (bf16 or f32)

    # Rows whose vertical neighbour is zero padding (top/bottom row of every
    # image in the stacked block). Also isolates images stacked along M so the
    # roll below can never bleed between images.
    row = lax.broadcasted_iota(jnp.int32, (M, L), 0)
    top = (row % H) == 0
    bot = (row % H) == (H - 1)

    def conv_bn(feat, w_ref, b_ref):
        # feat[h-1] / feat[h+1] via XLU roll + boundary mask (no concatenates).
        up = jnp.where(top, 0.0, pltpu.roll(feat, shift=1, axis=0))
        dn = jnp.where(bot, 0.0, pltpu.roll(feat, shift=M - 1, axis=0))
        y = jnp.dot(feat.astype(cdt), w_ref[1],
                    preferred_element_type=jnp.float32)
        y = y + jnp.dot(up.astype(cdt), w_ref[0],
                        preferred_element_type=jnp.float32)
        y = y + jnp.dot(dn.astype(cdt), w_ref[2],
                        preferred_element_type=jnp.float32)
        return y + b_ref[...]               # f32

    y1 = jnp.maximum(conv_bn(x, w1_ref, b1_ref), 0.0)   # conv1 + BN + ReLU
    y2 = conv_bn(y1, w2_ref, b2_ref)                     # conv2 + BN
    o_ref[...] = jnp.maximum(y2 + x, 0.0).astype(o_ref.dtype)


# ------------------------- wrappers -------------------------

def fold_bn(gamma, beta, running_mean, running_var, eps=BN_EPS):
    scale = gamma / jnp.sqrt(running_var + eps)
    bias = beta - running_mean * scale
    return scale, bias


def _band_weight(w_hwio, scale, W):
    """(3, W*Cin, W*Cout) banded matrices, one per vertical tap dy.

    Rows index (input column a, in-channel ci); columns index (output column
    c, out-channel co). Horizontal SAME padding is encoded as zero entries and
    the folded BN scale is baked into the output columns."""
    KH, KW, Cin, Cout = w_hwio.shape
    a = jnp.arange(W)[:, None]                  # input column
    c = jnp.arange(W)[None, :]                  # output column
    dx = a - c + (KW // 2)                      # horizontal tap index
    valid = ((dx >= 0) & (dx < KW)).astype(w_hwio.dtype)
    dxc = jnp.clip(dx, 0, KW - 1)
    B = w_hwio[:, dxc]                          # (KH, W, W, Cin, Cout)
    B = B * valid[None, :, :, None, None]
    B = B * scale[None, None, None, None, :]    # fold BN scale
    B = jnp.transpose(B, (0, 1, 3, 2, 4))       # (dy, a, ci, c, co)
    return B.reshape(KH, W * Cin, W * Cout)


def _choose_block_pairs(npairs, H):
    """Pairs of lane-packed images per grid step: fill the MXU M dimension
    (target M = mb*H up to 256), then prefer keeping >= 2 grid steps so v7x's
    two TensorCores both get work when the batch allows it."""
    best = 1
    for mb in range(1, npairs + 1):
        if npairs % mb == 0 and mb * H <= 256:
            best = mb
    if npairs // best < 2:
        for mb in range(best - 1, 0, -1):
            if npairs % mb == 0 and npairs // mb >= 2:
                best = mb
                break
    return best


def ru_forward(x_nchw, params, *, compute_dtype=jnp.bfloat16):
    """RU.forward: relu( conv_bn_relu(x) -> conv_bn -> + x )."""
    N, C, H, W = x_nchw.shape
    WC = W * C
    assert H % 8 == 0, "H must be a multiple of 8"  # TODO(synk): generalize via padding

    # Lane packing: put `pack` images side-by-side so the lane dim is a
    # multiple of 128 (unmasked vst; critical on v5e's single store slot).
    pack = 128 // WC if (WC <= 128 and 128 % WC == 0) else 1
    n_pad = (-N) % pack
    x_nhwc = jnp.transpose(x_nchw, (0, 2, 3, 1))                 # (N,H,W,C)
    if n_pad:
        x_nhwc = jnp.concatenate(
            [x_nhwc, jnp.zeros((n_pad, H, W, C), x_nhwc.dtype)], axis=0)
    npairs = (N + n_pad) // pack
    L = pack * WC

    # (npairs, pack, H, WC) -> (npairs, H, pack, WC) -> (npairs*H, L)
    x2d = (x_nhwc.reshape(npairs, pack, H, WC)
                 .transpose(0, 2, 1, 3)
                 .reshape(npairs * H, L))

    # Banded per-tap weights (BN scale folded), block-diagonal over the
    # lane-packed images; MXU operands in compute_dtype (bf16 on v6e/v7x).
    eye = jnp.eye(pack, dtype=jnp.float32)

    def pack_w(w, s):
        B = _band_weight(w.astype(jnp.float32), s.astype(jnp.float32), W)
        Bp = jnp.einsum("pq,dij->dpiqj", eye, B).reshape(3, L, L)
        return Bp.astype(compute_dtype)

    w1 = pack_w(params["w1"], params["s1"])
    w2 = pack_w(params["w2"], params["s2"])
    b1 = jnp.tile(params["b1"].astype(jnp.float32), pack * W).reshape(1, L)
    b2 = jnp.tile(params["b2"].astype(jnp.float32), pack * W).reshape(1, L)

    # Grid over row blocks of M = mb*H rows; weights/bias stay resident
    # (constant index_map) across steps.
    mb = _choose_block_pairs(npairs, H)
    grid = (npairs // mb,)
    M = mb * H

    kernel = functools.partial(_ru_kernel, H=H)
    out2d = pl.pallas_call(
        kernel,
        out_shape=jax.ShapeDtypeStruct((npairs * H, L), x_nchw.dtype),
        grid=grid,
        in_specs=[
            pl.BlockSpec((M, L), lambda n: (n, 0)),
            pl.BlockSpec((3, L, L), lambda n: (0, 0, 0)),
            pl.BlockSpec((1, L), lambda n: (0, 0)),
            pl.BlockSpec((3, L, L), lambda n: (0, 0, 0)),
            pl.BlockSpec((1, L), lambda n: (0, 0)),
        ],
        out_specs=pl.BlockSpec((M, L), lambda n: (n, 0)),
        compiler_params=pltpu.CompilerParams(
            dimension_semantics=("parallel",)),
    )(x2d, w1, b1, w2, b2)

    # Unpack lanes -> NHWC -> NCHW, drop any batch padding.
    out = (out2d.reshape(npairs, H, pack, W, C)
                 .transpose(0, 2, 1, 3, 4)
                 .reshape(npairs * pack, H, W, C))[:N]
    return jnp.transpose(out, (0, 3, 1, 2))


# ------------------------- reference (pure JAX, verification) -------------------------

def _conv_ref(x_nhwc, w_hwio, scale, bias, relu):
    y = lax.conv_general_dilated(
        x_nhwc.astype(jnp.float32), w_hwio.astype(jnp.float32),
        window_strides=(1, 1), padding=((1, 1), (1, 1)),
        dimension_numbers=("NHWC", "HWIO", "NHWC"))
    y = y * scale.reshape(1, 1, 1, -1) + bias.reshape(1, 1, 1, -1)
    return jnp.maximum(y, 0.0) if relu else y


def ru_ref(x_nchw, params):
    x = jnp.transpose(x_nchw, (0, 2, 3, 1)).astype(jnp.float32)
    z1 = _conv_ref(x, params["w1"], params["s1"], params["b1"], True)
    z = _conv_ref(z1, params["w2"], params["s2"], params["b2"], False)
    z = jnp.maximum(z + x, 0.0)
    return jnp.transpose(z, (0, 3, 1, 2))


# ------------------------- main -------------------------

if __name__ == "__main__":
    key = jax.random.PRNGKey(0)
    N, C, H, W = 2, 4, 16, 16          # z_previous_channels == z_channels == 4
    ks = jax.random.split(key, 11)

    x = jax.random.normal(ks[0], (N, C, H, W), jnp.float32)

    # Conv weights (HWIO layout), deterministic init.
    w1 = jax.random.normal(ks[1], (3, 3, C, C), jnp.float32) * 0.1
    w2 = jax.random.normal(ks[2], (3, 3, C, C), jnp.float32) * 0.1

    # BatchNorm params / running stats (eval-mode semantics), folded.
    g1 = 1.0 + 0.1 * jax.random.normal(ks[3], (C,), jnp.float32)
    be1 = 0.1 * jax.random.normal(ks[4], (C,), jnp.float32)
    m1 = 0.1 * jax.random.normal(ks[5], (C,), jnp.float32)
    v1 = jnp.abs(jax.random.normal(ks[6], (C,), jnp.float32)) + 0.5
    g2 = 1.0 + 0.1 * jax.random.normal(ks[7], (C,), jnp.float32)
    be2 = 0.1 * jax.random.normal(ks[8], (C,), jnp.float32)
    m2 = 0.1 * jax.random.normal(ks[9], (C,), jnp.float32)
    v2 = jnp.abs(jax.random.normal(ks[10], (C,), jnp.float32)) + 0.5

    s1, b1 = fold_bn(g1, be1, m1, v1)
    s2, b2 = fold_bn(g2, be2, m2, v2)
    params = {"w1": w1, "s1": s1, "b1": b1, "w2": w2, "s2": s2, "b2": b2}

    ref = jax.block_until_ready(ru_ref(x, params))

    # f32 MXU operands: exact-math check of the fused kernel structure.
    out_f32 = jax.block_until_ready(
        jax.jit(functools.partial(ru_forward, compute_dtype=jnp.float32))(x, params))
    assert out_f32.shape == (N, C, H, W)
    assert jnp.allclose(out_f32, ref, atol=1e-3, rtol=1e-3)

    # bf16 MXU operands (v6e/v7x perf config), f32 accumulate + elementwise.
    out_bf16 = jax.block_until_ready(
        jax.jit(functools.partial(ru_forward, compute_dtype=jnp.bfloat16))(x, params))
    assert out_bf16.shape == (N, C, H, W)
    assert jnp.allclose(out_bf16, ref, atol=5e-2, rtol=5e-2)   # bf16-rounding bound

    print("KERNEL_OK")
</pallas_src>

<mosaic_0001>
module attributes {stable_mosaic.version = 11 : i64} {
  func.func @_ru_kernel(%arg0: i32, %arg1: memref<16x128xf32, #tpu.memory_space<vmem>>, %arg2: memref<3x128x128xf32, #tpu.memory_space<vmem>>, %arg3: memref<1x128xf32, #tpu.memory_space<vmem>>, %arg4: memref<3x128x128xf32, #tpu.memory_space<vmem>>, %arg5: memref<1x128xf32, #tpu.memory_space<vmem>>, %arg6: memref<16x128xf32, #tpu.memory_space<vmem>>) attributes {dimension_semantics = [#tpu.dimension_semantics<parallel>], iteration_bounds = array<i64: 1>, scalar_prefetch = 0 : i64, scratch_operands = 0 : i64, tpu.core_type = #tpu.core_type<tc>, window_params = [{transform_indices = @transform_0, window_bounds = array<i64: 16, 128>}, {pipeline_mode = #tpu.pipeline_mode<synchronous>, transform_indices = @transform_1, window_bounds = array<i64: 3, 128, 128>}, {pipeline_mode = #tpu.pipeline_mode<synchronous>, transform_indices = @transform_2, window_bounds = array<i64: 1, 128>}, {pipeline_mode = #tpu.pipeline_mode<synchronous>, transform_indices = @transform_3, window_bounds = array<i64: 3, 128, 128>}, {pipeline_mode = #tpu.pipeline_mode<synchronous>, transform_indices = @transform_4, window_bounds = array<i64: 1, 128>}, {transform_indices = @transform_5, window_bounds = array<i64: 16, 128>}]} {
    %c0 = arith.constant 0 : index
    %c0_0 = arith.constant 0 : index
    %0 = vector.load %arg1[%c0, %c0_0] : memref<16x128xf32, #tpu.memory_space<vmem>>, vector<16x128xf32>
    %1 = tpu.iota {dimensions = array<i32: 0>} : vector<16x128xi32>
    %c16_i32 = arith.constant 16 : i32
    %c0_i32 = arith.constant 0 : i32
    %2 = arith.cmpi eq, %c16_i32, %c0_i32 : i32
    %c1_i32 = arith.constant 1 : i32
    %3 = arith.select %2, %c1_i32, %c16_i32 : i32
    %4 = vector.broadcast %3 : i32 to vector<16x128xi32>
    %5 = arith.remsi %1, %4 : vector<16x128xi32>
    %c0_i32_1 = arith.constant 0 : i32
    %6 = vector.broadcast %c0_i32_1 : i32 to vector<16x128xi32>
    %7 = arith.cmpi ne, %5, %6 : vector<16x128xi32>
    %c0_i32_2 = arith.constant 0 : i32
    %8 = vector.broadcast %c0_i32_2 : i32 to vector<16x128xi32>
    %9 = arith.cmpi slt, %5, %8 : vector<16x128xi32>
    %c0_i32_3 = arith.constant 0 : i32
    %10 = arith.cmpi slt, %3, %c0_i32_3 : i32
    %11 = vector.broadcast %10 : i1 to vector<16x128xi1>
    %12 = vector.broadcast %11 : vector<16x128xi1> to vector<16x128xi1>
    %13 = arith.xori %9, %12 : vector<16x128xi1>
    %14 = arith.andi %13, %7 : vector<16x128xi1>
    %15 = vector.broadcast %3 : i32 to vector<16x128xi32>
    %16 = arith.addi %5, %15 : vector<16x128xi32>
    %17 = arith.select %14, %16, %5 : vector<16x128xi1>, vector<16x128xi32>
    %c0_i32_4 = arith.constant 0 : i32
    %18 = vector.broadcast %c0_i32_4 : i32 to vector<16x128xi32>
    %19 = arith.cmpi eq, %17, %18 : vector<16x128xi32>
    %c16_i32_5 = arith.constant 16 : i32
    %c0_i32_6 = arith.constant 0 : i32
    %20 = arith.cmpi eq, %c16_i32_5, %c0_i32_6 : i32
    %c1_i32_7 = arith.constant 1 : i32
    %21 = arith.select %20, %c1_i32_7, %c16_i32_5 : i32
    %22 = vector.broadcast %21 : i32 to vector<16x128xi32>
    %23 = arith.remsi %1, %22 : vector<16x128xi32>
    %c0_i32_8 = arith.constant 0 : i32
    %24 = vector.broadcast %c0_i32_8 : i32 to vector<16x128xi32>
    %25 = arith.cmpi ne, %23, %24 : vector<16x128xi32>
    %c0_i32_9 = arith.constant 0 : i32
    %26 = vector.broadcast %c0_i32_9 : i32 to vector<16x128xi32>
    %27 = arith.cmpi slt, %23, %26 : vector<16x128xi32>
    %c0_i32_10 = arith.constant 0 : i32
    %28 = arith.cmpi slt, %21, %c0_i32_10 : i32
    %29 = vector.broadcast %28 : i1 to vector<16x128xi1>
    %30 = vector.broadcast %29 : vector<16x128xi1> to vector<16x128xi1>
    %31 = arith.xori %27, %30 : vector<16x128xi1>
    %32 = arith.andi %31, %25 : vector<16x128xi1>
    %33 = vector.broadcast %21 : i32 to vector<16x128xi32>
    %34 = arith.addi %23, %33 : vector<16x128xi32>
    %35 = arith.select %32, %34, %23 : vector<16x128xi1>, vector<16x128xi32>
    %c15_i32 = arith.constant 15 : i32
    %36 = vector.broadcast %c15_i32 : i32 to vector<16x128xi32>
    %37 = arith.cmpi eq, %35, %36 : vector<16x128xi32>
    %c1_i32_11 = arith.constant 1 : i32
    %38 = tpu.dynamic_rotate %0 by %c1_i32_11 dim 0 : vector<16x128xf32>, i32 -> vector<16x128xf32>
    %cst = arith.constant 0.000000e+00 : f32
    %39 = vector.broadcast %cst : f32 to vector<16x128xf32>
    %40 = arith.select %19, %39, %38 : vector<16x128xi1>, vector<16x128xf32>
    %c15_i32_12 = arith.constant 15 : i32
    %41 = tpu.dynamic_rotate %0 by %c15_i32_12 dim 0 : vector<16x128xf32>, i32 -> vector<16x128xf32>
    %cst_13 = arith.constant 0.000000e+00 : f32
    %42 = vector.broadcast %cst_13 : f32 to vector<16x128xf32>
    %43 = arith.select %37, %42, %41 : vector<16x128xi1>, vector<16x128xf32>
    %c1 = arith.constant 1 : index
    %c0_14 = arith.constant 0 : index
    %c0_15 = arith.constant 0 : index
    %44 = vector.load %arg2[%c1, %c0_14, %c0_15] : memref<3x128x128xf32, #tpu.memory_space<vmem>>, vector<1x128x128xf32>
    %45 = vector.shape_cast %44 : vector<1x128x128xf32> to vector<128x128xf32>
    %cst_16 = arith.constant dense<0.000000e+00> : vector<16x128xf32>
    %46 = tpu.matmul %0, %45, %cst_16 {dimension_numbers = #tpu.dot_dimension_numbers<[1], [0], [0], [1], [0, 0, 1, 1], [], []>} : vector<16x128xf32>, vector<128x128xf32>, vector<16x128xf32> -> vector<16x128xf32>
    %c0_17 = arith.constant 0 : index
    %c0_18 = arith.constant 0 : index
    %c0_19 = arith.constant 0 : index
    %47 = vector.load %arg2[%c0_17, %c0_18, %c0_19] : memref<3x128x128xf32, #tpu.memory_space<vmem>>, vector<1x128x128xf32>
    %48 = vector.shape_cast %47 : vector<1x128x128xf32> to vector<128x128xf32>
    %cst_20 = arith.constant dense<0.000000e+00> : vector<16x128xf32>
    %49 = tpu.matmul %40, %48, %cst_20 {dimension_numbers = #tpu.dot_dimension_numbers<[1], [0], [0], [1], [0, 0, 1, 1], [], []>} : vector<16x128xf32>, vector<128x128xf32>, vector<16x128xf32> -> vector<16x128xf32>
    %50 = arith.addf %46, %49 : vector<16x128xf32>
    %c2 = arith.constant 2 : index
    %c0_21 = arith.constant 0 : index
    %c0_22 = arith.constant 0 : index
    %51 = vector.load %arg2[%c2, %c0_21, %c0_22] : memref<3x128x128xf32, #tpu.memory_space<vmem>>, vector<1x128x128xf32>
    %52 = vector.shape_cast %51 : vector<1x128x128xf32> to vector<128x128xf32>
    %cst_23 = arith.constant dense<0.000000e+00> : vector<16x128xf32>
    %53 = tpu.matmul %43, %52, %cst_23 {dimension_numbers = #tpu.dot_dimension_numbers<[1], [0], [0], [1], [0, 0, 1, 1], [], []>} : vector<16x128xf32>, vector<128x128xf32>, vector<16x128xf32> -> vector<16x128xf32>
    %54 = arith.addf %50, %53 : vector<16x128xf32>
    %c0_24 = arith.constant 0 : index
    %c0_25 = arith.constant 0 : index
    %55 = vector.load %arg3[%c0_24, %c0_25] : memref<1x128xf32, #tpu.memory_space<vmem>>, vector<1x128xf32>
    %56 = vector.broadcast %55 : vector<1x128xf32> to vector<16x128xf32>
    %57 = arith.addf %54, %56 : vector<16x128xf32>
    %cst_26 = arith.constant 0.000000e+00 : f32
    %58 = vector.broadcast %cst_26 : f32 to vector<16x128xf32>
    %59 = arith.maximumf %57, %58 : vector<16x128xf32>
    %c1_i32_27 = arith.constant 1 : i32
    %60 = tpu.dynamic_rotate %59 by %c1_i32_27 dim 0 : vector<16x128xf32>, i32 -> vector<16x128xf32>
    %cst_28 = arith.constant 0.000000e+00 : f32
    %61 = vector.broadcast %cst_28 : f32 to vector<16x128xf32>
    %62 = arith.select %19, %61, %60 : vector<16x128xi1>, vector<16x128xf32>
    %c15_i32_29 = arith.constant 15 : i32
    %63 = tpu.dynamic_rotate %59 by %c15_i32_29 dim 0 : vector<16x128xf32>, i32 -> vector<16x128xf32>
    %cst_30 = arith.constant 0.000000e+00 : f32
    %64 = vector.broadcast %cst_30 : f32 to vector<16x128xf32>
    %65 = arith.select %37, %64, %63 : vector<16x128xi1>, vector<16x128xf32>
    %c1_31 = arith.constant 1 : index
    %c0_32 = arith.constant 0 : index
    %c0_33 = arith.constant 0 : index
    %66 = vector.load %arg4[%c1_31, %c0_32, %c0_33] : memref<3x128x128xf32, #tpu.memory_space<vmem>>, vector<1x128x128xf32>
    %67 = vector.shape_cast %66 : vector<1x128x128xf32> to vector<128x128xf32>
    %cst_34 = arith.constant dense<0.000000e+00> : vector<16x128xf32>
    %68 = tpu.matmul %59, %67, %cst_34 {dimension_numbers = #tpu.dot_dimension_numbers<[1], [0], [0], [1], [0, 0, 1, 1], [], []>} : vector<16x128xf32>, vector<128x128xf32>, vector<16x128xf32> -> vector<16x128xf32>
    %c0_35 = arith.constant 0 : index
    %c0_36 = arith.constant 0 : index
    %c0_37 = arith.constant 0 : index
    %69 = vector.load %arg4[%c0_35, %c0_36, %c0_37] : memref<3x128x128xf32, #tpu.memory_space<vmem>>, vector<1x128x128xf32>
    %70 = vector.shape_cast %69 : vector<1x128x128xf32> to vector<128x128xf32>
    %cst_38 = arith.constant dense<0.000000e+00> : vector<16x128xf32>
    %71 = tpu.matmul %62, %70, %cst_38 {dimension_numbers = #tpu.dot_dimension_numbers<[1], [0], [0], [1], [0, 0, 1, 1], [], []>} : vector<16x128xf32>, vector<128x128xf32>, vector<16x128xf32> -> vector<16x128xf32>
    %72 = arith.addf %68, %71 : vector<16x128xf32>
    %c2_39 = arith.constant 2 : index
    %c0_40 = arith.constant 0 : index
    %c0_41 = arith.constant 0 : index
    %73 = vector.load %arg4[%c2_39, %c0_40, %c0_41] : memref<3x128x128xf32, #tpu.memory_space<vmem>>, vector<1x128x128xf32>
    %74 = vector.shape_cast %73 : vector<1x128x128xf32> to vector<128x128xf32>
    %cst_42 = arith.constant dense<0.000000e+00> : vector<16x128xf32>
    %75 = tpu.matmul %65, %74, %cst_42 {dimension_numbers = #tpu.dot_dimension_numbers<[1], [0], [0], [1], [0, 0, 1, 1], [], []>} : vector<16x128xf32>, vector<128x128xf32>, vector<16x128xf32> -> vector<16x128xf32>
    %76 = arith.addf %72, %75 : vector<16x128xf32>
    %c0_43 = arith.constant 0 : index
    %c0_44 = arith.constant 0 : index
    %77 = vector.load %arg5[%c0_43, %c0_44] : memref<1x128xf32, #tpu.memory_space<vmem>>, vector<1x128xf32>
    %78 = vector.broadcast %77 : vector<1x128xf32> to vector<16x128xf32>
    %79 = arith.addf %76, %78 : vector<16x128xf32>
    %80 = arith.addf %79, %0 : vector<16x128xf32>
    %cst_45 = arith.constant 0.000000e+00 : f32
    %81 = vector.broadcast %cst_45 : f32 to vector<16x128xf32>
    %82 = arith.maximumf %80, %81 : vector<16x128xf32>
    %c0_46 = arith.constant 0 : index
    %c0_47 = arith.constant 0 : index
    %83 = vector.load %arg6[%c0_46, %c0_47] : memref<16x128xf32, #tpu.memory_space<vmem>>, vector<16x128xf32>
    tpu.vector_store %arg6[%c0_46, %c0_47], %82 {strides = array<i32>} : memref<16x128xf32, #tpu.memory_space<vmem>>, vector<16x128xf32>,
    return
  }
  func.func @transform_0(%arg0: i32) -> (i32, i32) {
    %c0_i32 = arith.constant 0 : i32
    %c0_i32_0 = arith.constant 0 : i32
    return %arg0, %c0_i32 : i32, i32
  }
  func.func @transform_1(%arg0: i32) -> (i32, i32, i32) {
    %c0_i32 = arith.constant 0 : i32
    %c0_i32_0 = arith.constant 0 : i32
    %c0_i32_1 = arith.constant 0 : i32
    %c0_i32_2 = arith.constant 0 : i32
    return %c0_i32, %c0_i32_0, %c0_i32_1 : i32, i32, i32
  }
  func.func @transform_2(%arg0: i32) -> (i32, i32) {
    %c0_i32 = arith.constant 0 : i32
    %c0_i32_0 = arith.constant 0 : i32
    %c0_i32_1 = arith.constant 0 : i32
    return %c0_i32, %c0_i32_0 : i32, i32
  }
  func.func @transform_3(%arg0: i32) -> (i32, i32, i32) {
    %c0_i32 = arith.constant 0 : i32
    %c0_i32_0 = arith.constant 0 : i32
    %c0_i32_1 = arith.constant 0 : i32
    %c0_i32_2 = arith.constant 0 : i32
    return %c0_i32, %c0_i32_0, %c0_i32_1 : i32, i32, i32
  }
  func.func @transform_4(%arg0: i32) -> (i32, i32) {
    %c0_i32 = arith.constant 0 : i32
    %c0_i32_0 = arith.constant 0 : i32
    %c0_i32_1 = arith.constant 0 : i32
    return %c0_i32, %c0_i32_0 : i32, i32
  }
  func.func @transform_5(%arg0: i32) -> (i32, i32) {
    %c0_i32 = arith.constant 0 : i32
    %c0_i32_0 = arith.constant 0 : i32
    return %arg0, %c0_i32 : i32, i32
  }
}

</mosaic_0001>

<bundles_post_ra>
// kernel: tile.13
= control target key start
LH: loop header
LB: loop body
LE: loop exit
PB: predicated region body
PF: predicated region fallthrough
CT: control target
= control target key end

     0   :  { %s40_s0 = inlined_call_operand.vmem [shape: f32[4], index: 0, kind: input, shape index: {}]   ;;  %s41_s1 = inlined_call_operand.vmem [shape: f32[32,4], index: 1, kind: output, shape index: {}]  }
   0x1   :  { %v4_v0 = vld [vmem:[%s40_s0] ss:$0 sm:$0xff] }
   0x2   :  { %5 = vst [vmem:[%s41_s1] sm:$0xff] %v4_v0  ;;  %12 = vst [vmem:[%s41_s1 + $0x8] sm:$0xff] %v4_v0 }
   0x3   :  { %13 = vst [vmem:[%s41_s1 + $0x10] sm:$0xff] %v4_v0  ;;  %14 = vst [vmem:[%s41_s1 + $0x18] sm:$0xff] %v4_v0 }

// kernel: tile.14
= control target key start
LH: loop header
LB: loop body
LE: loop exit
PB: predicated region body
PF: predicated region fallthrough
CT: control target
= control target key end

     0   :  { %s261_s10 = smov 124   ;;  %s262_s11 = smov 116   ;;  %vm3_vm0 = vcmask 31744   ;;  %vm9_vm1 = vcmask 1048544   ;;  %vm15_vm2 = vcmask 1015744   ;;  %vm21_vm3 = vcmask 982944   ;;  %s401_s0 = inlined_call_operand.vmem [shape: f32[32,4], index: 0, kind: input, shape index: {}]   ;;  %s402_s1 = inlined_call_operand.vmem [shape: f32[1,128], index: 1, kind: output, shape index: {}]  }
   0x1   :  { %v199_v0 = vld [vmem:[%s401_s0 + $0x1f] sm:$0x1]   ;;  %v201_v1 = vld [vmem:[%s401_s0 + $0x1d] sm:$0x1]   ;;  %v200_v2 = vld [vmem:[%s401_s0 + $0x1e] sm:$0x1]  }
   0x2   :  { %7 = vrot.lane.b32.xlu0 %v199_v0, %s261_s10  ;;  %19 = vrot.lane.b32.xlu1 %v201_v1, %s262_s11  ;;  %v202_v3 = vld [vmem:[%s401_s0 + $0x1c] sm:$0x1]   ;;  %s263_s16 = smov 120   ;;  %s264_s17 = smov 112   ;;  %v203_v4 = vld [vmem:[%s401_s0 + $0x1b] sm:$0x1]  }
   0x3   :  { %v204_v5 = vld [vmem:[%s401_s0 + $0x1a] sm:$0x1]   ;;  %s265_s22 = smov 108   ;;  %s266_s23 = smov 104   ;;  %v205_v6 = vld [vmem:[%s401_s0 + $0x19] sm:$0x1]  }
   0x4   :  { %v206_v7 = vld [vmem:[%s401_s0 + $0x18] sm:$0x1]   ;;  %s267_s28 = smov 100   ;;  %s268_s29 = smov 96   ;;  %v207_v8 = vld [vmem:[%s401_s0 + $0x17] sm:$0x1]  }
   0x5   :  { %v208_v9 = vld [vmem:[%s401_s0 + $0x16] sm:$0x1]   ;;  %v2_v10 = vld [vmem:[%s401_s0] sm:$0x1]   ;;  %s269_s7 = smov 92   ;;  %s270_s8 = smov 88  }
   0x6   :  { %13 = vrot.lane.b32.xlu0 %v200_v2, %s263_s16  ;;  %25 = vrot.lane.b32.xlu1 %v202_v3, %s264_s17  ;;  %4 = vst.msk [vmem:[#allocation0] sm:$0x1] %vm3_vm0, %v2_v10   ;;  %v209_v11 = vld [vmem:[%s401_s0 + $0x15] sm:$0x1]   ;;  %v210_v12 = vld [vmem:[%s401_s0 + $0x14] sm:$0x1]  }
   0x7   :  { %s271_s13 = smov 84   ;;  %s272_s14 = smov 80   ;;  %v211_v13 = vld [vmem:[%s401_s0 + $0x13] sm:$0x1]   ;;  %v212_v14 = vld [vmem:[%s401_s0 + $0x12] sm:$0x1]  }
   0x8   :  { %s273_s19 = smov 76   ;;  %s274_s20 = smov 72   ;;  %v213_v15 = vld [vmem:[%s401_s0 + $0x11] sm:$0x1]   ;;  %v214_v16 = vld [vmem:[%s401_s0 + $0x10] sm:$0x1]  }
   0x9   :  { %s275_s25 = smov 68   ;;  %s276_s26 = smov 64   ;;  %v215_v17 = vld [vmem:[%s401_s0 + $0xf] sm:$0x1]   ;;  %v216_v18 = vld [vmem:[%s401_s0 + $0xe] sm:$0x1]  }
   0xa   :  { %31 = vrot.lane.b32.xlu0 %v203_v4, %s265_s22  ;;  %37 = vrot.lane.b32.xlu1 %v204_v5, %s266_s23  ;;  %s277_s2 = smov 60   ;;  %s278_s3 = smov 56   ;;  %v217_v19 = vld [vmem:[%s401_s0 + $0xd] sm:$0x1]   ;;  %v218_v20 = vld [vmem:[%s401_s0 + $0xc] sm:$0x1]  }
   0xb   :  { %s280_s9 = smov 48   ;;  %v219_v21 = vld [vmem:[%s401_s0 + $0xb] sm:$0x1]   ;;  %v220_v22 = vld [vmem:[%s401_s0 + $0xa] sm:$0x1]   ;;  %s282_s15 = smov 40  }
   0xc   :  { %v221_v23 = vld [vmem:[%s401_s0 + $0x9] sm:$0x1]   ;;  %v222_v24 = vld [vmem:[%s401_s0 + $0x8] sm:$0x1]   ;;  %s284_s21 = smov 32   ;;  %s286_s27 = smov 24  }
   0xd   :  { %v223_v25 = vld [vmem:[%s401_s0 + $0x7] sm:$0x1]   ;;  %v224_v26 = vld [vmem:[%s401_s0 + $0x6] sm:$0x1]   ;;  %v225_v27 = vld [vmem:[%s401_s0 + $0x5] sm:$0x1]  }
   0xe   :  { %43 = vrot.lane.b32.xlu0 %v205_v6, %s267_s28  ;;  %49 = vrot.lane.b32.xlu1 %v206_v7, %s268_s29  ;;  %v226_v28 = vld [vmem:[%s401_s0 + $0x4] sm:$0x1]   ;;  %s288_s4 = smov 16   ;;  %v227_v29 = vld [vmem:[%s401_s0 + $0x3] sm:$0x1]   ;;  %s290_s10 = smov 8  }
   0xf   :  { %v228_v30 = vld [vmem:[%s401_s0 + $0x2] sm:$0x1]   ;;  %v229_v31 = vld [vmem:[%s401_s0 + $0x1] sm:$0x1]   ;;  %s291_s0 = smov 4   ;;  %vm27_vm4 = vcmask 950144  }
  0x10   :  { %vm33_vm5 = vcmask 917344   ;;  %vm39_vm6 = vcmask 884544   ;;  %vm45_vm7 = vcmask 851744   ;;  %vm51_vm8 = vcmask 818944  }
  0x11   :  { %vm57_vm9 = vcmask 786144   ;;  %vm63_vm10 = vcmask 753344   ;;  %vm69_vm11 = vcmask 720544   ;;  %vm75_vm12 = vcmask 687744  }
  0x12   :  { %55 = vrot.lane.b32.xlu0 %v207_v8, %s269_s7  ;;  %61 = vrot.lane.b32.xlu1 %v208_v9, %s270_s8  ;;  %s279_s8 = smov 52   ;;  %vm81_vm13 = vcmask 654944   ;;  %vm87_vm14 = vcmask 622144   ;;  %vm93_vm15 = vcmask 589344   ;;  %vm99_vm0 = vcmask 556544  }
  0x16   :  { %67 = vrot.lane.b32.xlu0 %v209_v11, %s271_s13  ;;  %73 = vrot.lane.b32.xlu1 %v210_v12, %s272_s14  ;;  %s281_s14 = smov 44  }
  0x1a   :  { %79 = vrot.lane.b32.xlu0 %v211_v13, %s273_s19  ;;  %85 = vrot.lane.b32.xlu1 %v212_v14, %s274_s20  ;;  %s283_s20 = smov 36  }
  0x1e   :  { %91 = vrot.lane.b32.xlu0 %v213_v15, %s275_s25  ;;  %97 = vrot.lane.b32.xlu1 %v214_v16, %s276_s26  ;;  %s285_s26 = smov 28  }
  0x22   :  { %103 = vrot.lane.b32.xlu0 %v215_v17, %s277_s2  ;;  %109 = vrot.lane.b32.xlu1 %v216_v18, %s278_s3  ;;  %s287_s3 = smov 20  }
  0x26   :  { %115 = vrot.lane.b32.xlu0 %v217_v19, %s279_s8  ;;  %121 = vrot.lane.b32.xlu1 %v218_v20, %s280_s9  ;;  %s289_s9 = smov 12  }
  0x2a   :  { %127 = vrot.lane.b32.xlu0 %v219_v21, %s281_s14  ;;  %133 = vrot.lane.b32.xlu1 %v220_v22, %s282_s15 }
  0x2e   :  { %139 = vrot.lane.b32.xlu0 %v221_v23, %s283_s20  ;;  %145 = vrot.lane.b32.xlu1 %v222_v24, %s284_s21 }
  0x32   :  { %151 = vrot.lane.b32.xlu0 %v223_v25, %s285_s26  ;;  %157 = vrot.lane.b32.xlu1 %v224_v26, %s286_s27 }
  0x36   :  { %163 = vrot.lane.b32.xlu0 %v225_v27, %s287_s3  ;;  %169 = vrot.lane.b32.xlu1 %v226_v28, %s288_s4 }
  0x3a   :  { %175 = vrot.lane.b32.xlu0 %v227_v29, %s289_s9  ;;  %181 = vrot.lane.b32.xlu1 %v228_v30, %s290_s10 }
  0x3e   :  { %187 = vrot.lane.b32.xlu0 %v229_v31, %s291_s0 }
  0x74   :  { %v8_v32 = vpop.permute.xlu0 %7   ;;  %v20_v33 = vpop.permute.xlu1 %19  }
  0x75   :  { %10 = vst.msk [vmem:[#allocation0] sm:$0x1] %vm9_vm1, %v8_v32   ;;  %vm105_vm1 = vcmask 523744  }
  0x78   :  { %v14_v34 = vpop.permute.xlu0 %13   ;;  %v26_v35 = vpop.permute.xlu1 %25  }
  0x79   :  { %16 = vst.msk [vmem:[#allocation0] sm:$0x1] %vm15_vm2, %v14_v34   ;;  %vm111_vm2 = vcmask 490944  }
  0x7a   :  { %22 = vst.msk [vmem:[#allocation0] sm:$0x1] %vm21_vm3, %v20_v33   ;;  %vm117_vm3 = vcmask 458144  }
  0x7b   :  { %28 = vst.msk [vmem:[#allocation0] sm:$0x1] %vm27_vm4, %v26_v35   ;;  %vm123_vm4 = vcmask 425344  }
  0x7c   :  { %v32_v36 = vpop.permute.xlu0 %31   ;;  %v38_v37 = vpop.permute.xlu1 %37  }
  0x7d   :  { %34 = vst.msk [vmem:[#allocation0] sm:$0x1] %vm33_vm5, %v32_v36   ;;  %vm129_vm5 = vcmask 392544  }
  0x7e   :  { %40 = vst.msk [vmem:[#allocation0] sm:$0x1] %vm39_vm6, %v38_v37   ;;  %vm135_vm6 = vcmask 359744  }
  0x80   :  { %v44_v38 = vpop.permute.xlu0 %43   ;;  %v50_v39 = vpop.permute.xlu1 %49  }
  0x81   :  { %46 = vst.msk [vmem:[#allocation0] sm:$0x1] %vm45_vm7, %v44_v38   ;;  %vm141_vm7 = vcmask 326944  }
  0x82   :  { %52 = vst.msk [vmem:[#allocation0] sm:$0x1] %vm51_vm8, %v50_v39   ;;  %vm147_vm8 = vcmask 294144  }
  0x84   :  { %v56_v40 = vpop.permute.xlu0 %55   ;;  %v62_v41 = vpop.permute.xlu1 %61  }
  0x85   :  { %58 = vst.msk [vmem:[#allocation0] sm:$0x1] %vm57_vm9, %v56_v40   ;;  %vm153_vm9 = vcmask 261344  }
  0x86   :  { %64 = vst.msk [vmem:[#allocation0] sm:$0x1] %vm63_vm10, %v62_v41   ;;  %vm159_vm10 = vcmask 228544  }
  0x88   :  { %v68_v42 = vpop.permute.xlu0 %67   ;;  %v74_v43 = vpop.permute.xlu1 %73  }
  0x89   :  { %70 = vst.msk [vmem:[#allocation0] sm:$0x1] %vm69_vm11, %v68_v42   ;;  %vm165_vm11 = vcmask 195744  }
  0x8a   :  { %76 = vst.msk [vmem:[#allocation0] sm:$0x1] %vm75_vm12, %v74_v43   ;;  %vm171_vm12 = vcmask 162944  }
  0x8c   :  { %v80_v44 = vpop.permute.xlu0 %79   ;;  %v86_v45 = vpop.permute.xlu1 %85  }
  0x8d   :  { %82 = vst.msk [vmem:[#allocation0] sm:$0x1] %vm81_vm13, %v80_v44   ;;  %vm177_vm13 = vcmask 130144  }
  0x8e   :  { %88 = vst.msk [vmem:[#allocation0] sm:$0x1] %vm87_vm14, %v86_v45   ;;  %vm183_vm14 = vcmask 97344  }
  0x90   :  { %v92_v46 = vpop.permute.xlu0 %91   ;;  %v98_v47 = vpop.permute.xlu1 %97  }
  0x91   :  { %94 = vst.msk [vmem:[#allocation0] sm:$0x1] %vm93_vm15, %v92_v46   ;;  %vm189_vm15 = vcmask 64544  }
  0x92   :  { %100 = vst.msk [vmem:[#allocation0] sm:$0x1] %vm99_vm0, %v98_v47  }
  0x94   :  { %v104_v48 = vpop.permute.xlu0 %103   ;;  %v110_v49 = vpop.permute.xlu1 %109  }
  0x95   :  { %106 = vst.msk [vmem:[#allocation0] sm:$0x1] %vm105_vm1, %v104_v48  }
  0x96   :  { %112 = vst.msk [vmem:[#allocation0] sm:$0x1] %vm111_vm2, %v110_v49  }
  0x98   :  { %v116_v50 = vpop.permute.xlu0 %115   ;;  %v122_v51 = vpop.permute.xlu1 %121  }
  0x99   :  { %118 = vst.msk [vmem:[#allocation0] sm:$0x1] %vm117_vm3, %v116_v50  }
  0x9a   :  { %124 = vst.msk [vmem:[#allocation0] sm:$0x1] %vm123_vm4, %v122_v51  }
  0x9c   :  { %v128_v52 = vpop.permute.xlu0 %127   ;;  %v134_v53 = vpop.permute.xlu1 %133  }
  0x9d   :  { %130 = vst.msk [vmem:[#allocation0] sm:$0x1] %vm129_vm5, %v128_v52  }
  0x9e   :  { %136 = vst.msk [vmem:[#allocation0] sm:$0x1] %vm135_vm6, %v134_v53  }
  0xa0   :  { %v140_v54 = vpop.permute.xlu0 %139   ;;  %v146_v55 = vpop.permute.xlu1 %145  }
  0xa1   :  { %142 = vst.msk [vmem:[#allocation0] sm:$0x1] %vm141_vm7, %v140_v54  }
  0xa2   :  { %148 = vst.msk [vmem:[#allocation0] sm:$0x1] %vm147_vm8, %v146_v55  }
  0xa4   :  { %v152_v56 = vpop.permute.xlu0 %151   ;;  %v158_v57 = vpop.permute.xlu1 %157  }
  0xa5   :  { %154 = vst.msk [vmem:[#allocation0] sm:$0x1] %vm153_vm9, %v152_v56  }
  0xa6   :  { %160 = vst.msk [vmem:[#allocation0] sm:$0x1] %vm159_vm10, %v158_v57  }
  0xa8   :  { %v164_v58 = vpop.permute.xlu0 %163   ;;  %v170_v59 = vpop.permute.xlu1 %169  }
  0xa9   :  { %166 = vst.msk [vmem:[#allocation0] sm:$0x1] %vm165_vm11, %v164_v58  }
  0xaa   :  { %172 = vst.msk [vmem:[#allocation0] sm:$0x1] %vm171_vm12, %v170_v59  }
  0xac   :  { %v176_v60 = vpop.permute.xlu0 %175   ;;  %v182_v61 = vpop.permute.xlu1 %181  }
  0xad   :  { %178 = vst.msk [vmem:[#allocation0] sm:$0x1] %vm177_vm13, %v176_v60  }
  0xae   :  { %184 = vst.msk [vmem:[#allocation0] sm:$0x1] %vm183_vm14, %v182_v61  }
  0xb0   :  { %v188_v62 = vpop.permute.xlu0 %187  }
  0xb1   :  { %190 = vst.msk [vmem:[#allocation0] sm:$0x1] %vm189_vm15, %v188_v62  }
  0xb8   :  { %v195_v63 = vld [vmem:[#allocation0] sm:$0x1] }
  0xb9   :  { %198 = vst [vmem:[%s402_s1] sm:$0x1] %v195_v63 }

// kernel: ru_forward.1
= control target key start
LH: loop header
LB: loop body
LE: loop exit
PB: predicated region body
PF: predicated region fallthrough
CT: control target
= control target key end

     0   :  { %v22_v20 = vlaneseq  ;;  %s1456_s1 = inlined_call_operand.vmem [shape: f32[3,128,128], index: 1, kind: input, shape index: {}]   ;;  %s1457_s0 = inlined_call_operand.vmem [shape: f32[16,128], index: 0, kind: input, shape index: {}]   ;;  %s1458_s3 = inlined_call_operand.vmem [shape: f32[3,128,128], index: 3, kind: input, shape index: {}]   ;;  %s1459_s2 = inlined_call_operand.vmem [shape: f32[1,128], index: 2, kind: input, shape index: {}]   ;;  %s1460_s4 = inlined_call_operand.vmem [shape: f32[1,128], index: 4, kind: input, shape index: {}]   ;;  %s1461_s5 = inlined_call_operand.vmem [shape: f32[16,128], index: 5, kind: output, shape index: {}]  }
   0x1   :  { %v99_v0 = vld [vmem:[%s1456_s1 + $0x78] sm:$0xff]  ;;  %v98_v2 = vld [vmem:[%s1456_s1 + $0x70] sm:$0xff]  ;;  %v97_v4 = vld [vmem:[%s1456_s1 + $0x68] sm:$0xff] }
   0x2   :  { %v678_v1 = vld [vmem:[%s1456_s1 + $0xf8] sm:$0xff]  ;;  %847 = vmatprep.subr.mxu0 %v99_v0  ;;  %v677_v3 = vld [vmem:[%s1456_s1 + $0xf0] sm:$0xff]  ;;  %v676_v5 = vld [vmem:[%s1456_s1 + $0xe8] sm:$0xff]  ;;  %v1162_v26 = vshrl.u32 %v22_v20, 7 }
   0x3   :  { %882 = vmatprep.subr.mxu1 %v678_v1  ;;  %848 = vmatpush3.msra.mxu0 %v99_v0  ;;  %v96_v6 = vld [vmem:[%s1456_s1 + $0x60] sm:$0xff]  ;;  %v95_v8 = vld [vmem:[%s1456_s1 + $0x58] sm:$0xff]  ;;  %v94_v10 = vld [vmem:[%s1456_s1 + $0x50] sm:$0xff] }
   0x4   :  { %883 = vmatpush3.msra.mxu1 %v678_v1  ;;  %849 = vmatprep.subr.mxu0 %v98_v2  ;;  %v675_v7 = vld [vmem:[%s1456_s1 + $0xe0] sm:$0xff]  ;;  %v674_v9 = vld [vmem:[%s1456_s1 + $0xd8] sm:$0xff]  ;;  %v673_v11 = vld [vmem:[%s1456_s1 + $0xd0] sm:$0xff]  ;;  %v29_v32 = vand.u32 15, %v1162_v26  ;;  %vm55_vm0 = vcmp.lt.s32.totalorder %v1162_v26, 1  ;;  %vm62_vm2 = vcmp.lt.s32.totalorder %v1162_v26, 7 }
   0x5   :  { %884 = vmatprep.subr.mxu1 %v677_v3  ;;  %850 = vmatpush3.msra.mxu0 %v98_v2  ;;  %v93_v12 = vld [vmem:[%s1456_s1 + $0x48] sm:$0xff]  ;;  %v92_v14 = vld [vmem:[%s1456_s1 + $0x40] sm:$0xff]  ;;  %v91_v16 = vld [vmem:[%s1456_s1 + $0x38] sm:$0xff]  ;;  %v24_v58 = vadd.s32 8, %v1162_v26 }
   0x6   :  { %885 = vmatpush3.msra.mxu1 %v677_v3  ;;  %851 = vmatprep.subr.mxu0 %v97_v4  ;;  %v672_v13 = vld [vmem:[%s1456_s1 + $0xc8] sm:$0xff]  ;;  %v671_v15 = vld [vmem:[%s1456_s1 + $0xc0] sm:$0xff]  ;;  %v670_v17 = vld [vmem:[%s1456_s1 + $0xb8] sm:$0xff]  ;;  %vm1203_vm1 = vcmp.ne.s32.totalorder %v29_v32, 0 }
   0x7   :  { %886 = vmatprep.subr.mxu1 %v676_v5  ;;  %852 = vmatpush3.msra.mxu0 %v97_v4  ;;  %v90_v18 = vld [vmem:[%s1456_s1 + $0x30] sm:$0xff]  ;;  %v89_v21 = vld [vmem:[%s1456_s1 + $0x28] sm:$0xff]  ;;  %v88_v23 = vld [vmem:[%s1456_s1 + $0x20] sm:$0xff]  ;;  %v36_v61 = vand.u32 15, %v24_v58 }
   0x8   :  { %887 = vmatpush3.msra.mxu1 %v676_v5  ;;  %853 = vmatprep.subr.mxu0 %v96_v6  ;;  %v669_v19 = vld [vmem:[%s1456_s1 + $0xb0] sm:$0xff]  ;;  %v668_v22 = vld [vmem:[%s1456_s1 + $0xa8] sm:$0xff]  ;;  %v667_v24 = vld [vmem:[%s1456_s1 + $0xa0] sm:$0xff] }
   0x9   :  { %888 = vmatprep.subr.mxu1 %v675_v7  ;;  %854 = vmatpush3.msra.mxu0 %v96_v6  ;;  %v87_v25 = vld [vmem:[%s1456_s1 + $0x18] sm:$0xff]  ;;  %v1170_v28 = vld [vmem:[%s1457_s0] sm:$0xff]  ;;  %v1175_v29 = vld [vmem:[%s1457_s0 + $0x8] sm:$0xff]  ;;  %vm1275_vm3 = vcmp.ne.s32.totalorder %v36_v61, 15 }
   0xa   :  { %889 = vmatpush3.msra.mxu1 %v675_v7  ;;  %855 = vmatprep.subr.mxu0 %v95_v8  ;;  %v666_v27 = vld [vmem:[%s1456_s1 + $0x98] sm:$0xff]  ;;  %v86_v30 = vld [vmem:[%s1456_s1 + $0x10] sm:$0xff]  ;;  %v53_v33 = vrot.slane %v1170_v28, 7  ;;  %v54_v34 = vrot.slane %v1175_v29, 7  ;;  %v85_v35 = vld [vmem:[%s1456_s1 + $0x8] sm:$0xff]  ;;  %v60_v39 = vrot.slane %v1170_v28, 1 }
   0xb   :  { %890 = vmatprep.subr.mxu1 %v674_v9  ;;  %856 = vmatpush3.msra.mxu0 %v95_v8  ;;  %v665_v31 = vld [vmem:[%s1456_s1 + $0x90] sm:$0xff]  ;;  %v664_v36 = vld [vmem:[%s1456_s1 + $0x88] sm:$0xff]  ;;  %v84_v37 = vld [vmem:[%s1456_s1] sm:$0xff]  ;;  %v61_v40 = vrot.slane %v1175_v29, 1 }
   0xc   :  { %891 = vmatpush3.msra.mxu1 %v674_v9  ;;  %857 = vmatprep.subr.mxu0 %v94_v10  ;;  %v663_v38 = vld [vmem:[%s1456_s1 + $0x80] sm:$0xff]  ;;  %v57_v41 = vsel %vm55_vm0, %v54_v34, %v53_v33  ;;  %v56_v43 = vsel %vm55_vm0, %v53_v33, %v54_v34  ;;  %v696_v44 = vld [vmem:[%s1456_s1 + $0x178] sm:$0xff]  ;;  %v695_v46 = vld [vmem:[%s1456_s1 + $0x170] sm:$0xff] }
   0xd   :  { %892 = vmatprep.subr.mxu1 %v673_v11  ;;  %858 = vmatpush3.msra.mxu0 %v94_v10  ;;  %v63_v45 = vsel %vm62_vm2, %v60_v39, %v61_v40  ;;  %v694_v47 = vld [vmem:[%s1456_s1 + $0x168] sm:$0xff]  ;;  %v693_v48 = vld [vmem:[%s1456_s1 + $0x160] sm:$0xff]  ;;  %v692_v49 = vld [vmem:[%s1456_s1 + $0x158] sm:$0xff]  ;;  %v64_v63 = vsel %vm62_vm2, %v61_v40, %v60_v39 }
   0xe   :  { %893 = vmatpush3.msra.mxu1 %v673_v11  ;;  %859 = vmatprep.subr.mxu0 %v93_v12  ;;  %v691_v50 = vld [vmem:[%s1456_s1 + $0x150] sm:$0xff]  ;;  %v690_v51 = vld [vmem:[%s1456_s1 + $0x148] sm:$0xff]  ;;  %v689_v52 = vld [vmem:[%s1456_s1 + $0x140] sm:$0xff] }
   0xf   :  { %894 = vmatprep.subr.mxu1 %v672_v13  ;;  %860 = vmatpush3.msra.mxu0 %v93_v12  ;;  %v688_v53 = vld [vmem:[%s1456_s1 + $0x138] sm:$0xff]  ;;  %v687_v54 = vld [vmem:[%s1456_s1 + $0x130] sm:$0xff]  ;;  %v686_v55 = vld [vmem:[%s1456_s1 + $0x128] sm:$0xff] }
  0x10   :  { %895 = vmatpush3.msra.mxu1 %v672_v13  ;;  %861 = vmatprep.subr.mxu0 %v92_v14  ;;  %v685_v56 = vld [vmem:[%s1456_s1 + $0x120] sm:$0xff]  ;;  %v684_v57 = vld [vmem:[%s1456_s1 + $0x118] sm:$0xff]  ;;  %v683_v59 = vld [vmem:[%s1456_s1 + $0x110] sm:$0xff] }
  0x11   :  { %896 = vmatprep.subr.mxu1 %v671_v15  ;;  %862 = vmatpush3.msra.mxu0 %v92_v14  ;;  %v682_v60 = vld [vmem:[%s1456_s1 + $0x108] sm:$0xff]  ;;  %v681_v62 = vld [vmem:[%s1456_s1 + $0x100] sm:$0xff]  ;;  %v715_v1 = vld [vmem:[%s1458_s3 + $0xf8] sm:$0xff] }
  0x12   :  { %897 = vmatpush3.msra.mxu1 %v671_v15  ;;  %863 = vmatprep.subr.mxu0 %v91_v16  ;;  %v399_v2 = vld [vmem:[%s1458_s3 + $0x78] sm:$0xff]  ;;  %v714_v3 = vld [vmem:[%s1458_s3 + $0xf0] sm:$0xff]  ;;  %v713_v5 = vld [vmem:[%s1458_s3 + $0xe8] sm:$0xff] }
  0x13   :  { %898 = vmatprep.subr.mxu1 %v670_v17  ;;  %864 = vmatpush3.msra.mxu0 %v91_v16  ;;  %v398_v4 = vld [vmem:[%s1458_s3 + $0x70] sm:$0xff]  ;;  %v397_v6 = vld [vmem:[%s1458_s3 + $0x68] sm:$0xff]  ;;  %v712_v7 = vld [vmem:[%s1458_s3 + $0xe0] sm:$0xff] }
  0x14   :  { %899 = vmatpush3.msra.mxu1 %v670_v17  ;;  %865 = vmatprep.subr.mxu0 %v90_v18  ;;  %v396_v8 = vld [vmem:[%s1458_s3 + $0x60] sm:$0xff]  ;;  %v711_v9 = vld [vmem:[%s1458_s3 + $0xd8] sm:$0xff]  ;;  %v710_v11 = vld [vmem:[%s1458_s3 + $0xd0] sm:$0xff] }
  0x15   :  { %900 = vmatprep.subr.mxu1 %v669_v19  ;;  %866 = vmatpush3.msra.mxu0 %v90_v18  ;;  %v395_v10 = vld [vmem:[%s1458_s3 + $0x58] sm:$0xff]  ;;  %v394_v12 = vld [vmem:[%s1458_s3 + $0x50] sm:$0xff]  ;;  %v709_v13 = vld [vmem:[%s1458_s3 + $0xc8] sm:$0xff] }
  0x16   :  { %901 = vmatpush3.msra.mxu1 %v669_v19  ;;  %867 = vmatprep.subr.mxu0 %v89_v21  ;;  %v393_v14 = vld [vmem:[%s1458_s3 + $0x48] sm:$0xff]  ;;  %v708_v15 = vld [vmem:[%s1458_s3 + $0xc0] sm:$0xff]  ;;  %v707_v17 = vld [vmem:[%s1458_s3 + $0xb8] sm:$0xff] }
  0x17   :  { %902 = vmatprep.subr.mxu1 %v668_v22  ;;  %868 = vmatpush3.msra.mxu0 %v89_v21  ;;  %v392_v16 = vld [vmem:[%s1458_s3 + $0x40] sm:$0xff]  ;;  %v391_v18 = vld [vmem:[%s1458_s3 + $0x38] sm:$0xff]  ;;  %v706_v19 = vld [vmem:[%s1458_s3 + $0xb0] sm:$0xff] }
  0x18   :  { %903 = vmatpush3.msra.mxu1 %v668_v22  ;;  %869 = vmatprep.subr.mxu0 %v88_v23  ;;  %v390_v20 = vld [vmem:[%s1458_s3 + $0x30] sm:$0xff]  ;;  %v705_v21 = vld [vmem:[%s1458_s3 + $0xa8] sm:$0xff]  ;;  %v700_v34 = vld [vmem:[%s1458_s3 + $0x80] sm:$0xff] }
  0x19   :  { %904 = vmatprep.subr.mxu1 %v667_v24  ;;  %870 = vmatpush3.msra.mxu0 %v88_v23  ;;  %v389_v22 = vld [vmem:[%s1458_s3 + $0x28] sm:$0xff]  ;;  %v704_v23 = vld [vmem:[%s1458_s3 + $0xa0] sm:$0xff] }
  0x1a   :  { %905 = vmatpush3.msra.mxu1 %v667_v24  ;;  %871 = vmatprep.subr.mxu0 %v87_v25  ;;  %v388_v24 = vld [vmem:[%s1458_s3 + $0x20] sm:$0xff]  ;;  %v701_v32 = vld [vmem:[%s1458_s3 + $0x88] sm:$0xff] }
  0x1b   :  { %906 = vmatprep.subr.mxu1 %v666_v27  ;;  %872 = vmatpush3.msra.mxu0 %v87_v25  ;;  %v703_v25 = vld [vmem:[%s1458_s3 + $0x98] sm:$0xff]  ;;  %v385_v33 = vld [vmem:[%s1458_s3 + $0x8] sm:$0xff]  ;;  %v730_v42 = vld [vmem:[%s1458_s3 + $0x160] sm:$0xff] }
  0x1c   :  { %907 = vmatpush3.msra.mxu1 %v666_v27  ;;  %873 = vmatprep.subr.mxu0 %v86_v30  ;;  %v387_v27 = vld [vmem:[%s1458_s3 + $0x18] sm:$0xff]  ;;  %v731_v61 = vld [vmem:[%s1458_s3 + $0x168] sm:$0xff] }
  0x1d   :  { %908 = vmatprep.subr.mxu1 %v665_v31  ;;  %874 = vmatpush3.msra.mxu0 %v86_v30  ;;  %v702_v30 = vld [vmem:[%s1458_s3 + $0x90] sm:$0xff] }
  0x1e   :  { %909 = vmatpush3.msra.mxu1 %v665_v31  ;;  %875 = vmatprep.subr.mxu0 %v85_v35  ;;  %v386_v31 = vld [vmem:[%s1458_s3 + $0x10] sm:$0xff] }
  0x1f   :  { %910 = vmatprep.subr.mxu1 %v664_v36  ;;  %876 = vmatpush3.msra.mxu0 %v85_v35  ;;  %v384_v35 = vld [vmem:[%s1458_s3] sm:$0xff] }
  0x20   :  { %911 = vmatpush3.msra.mxu1 %v664_v36  ;;  %877 = vmatprep.subr.mxu0 %v84_v37  ;;  %v733_v36 = vld [vmem:[%s1458_s3 + $0x178] sm:$0xff] }
  0x21   :  { %912 = vmatprep.subr.mxu1 %v663_v38  ;;  %878 = vmatpush3.msra.mxu0 %v84_v37 }
  0x22   :  { %879 = vmatprep.mubr.msk.f32.mxu0 %vm1203_vm1, %v57_v41  ;;  %913 = vmatpush3.msra.mxu1 %v663_v38 }
  0x23   :  { %914 = vmatprep.mubr.f32.mxu1 %v1170_v28  ;;  %880 = vmatmul.mubr.f32.vlgmr.msra.gmra.mxu0 %v56_v43 }
  0x24   :  { %915 = vmatmul.mubr.f32.vlgmr.msra.gmra.mxu1 %v1175_v29  ;;  %917 = vmatprep.subr.mxu0 %v696_v44 }
  0x25   :  { %949 = vmatprep.mubr.f32.mxu0 %v63_v45  ;;  %918 = vmatpush3.msra.mxu0 %v696_v44  ;;  %v699_v44 = vld [vmem:[%s1459_s2] ss:$0 sm:$0xff] }
  0x26   :  { %919 = vmatprep.subr.mxu0 %v695_v46  ;;  %952 = vmatprep.subr.mxu1 %v399_v2 }
  0x27   :  { %920 = vmatpush3.msra.mxu0 %v695_v46  ;;  %953 = vmatpush3.msra.mxu1 %v399_v2  ;;  %v726_v2 = vld [vmem:[%s1458_s3 + $0x140] sm:$0xff] }
  0x28   :  { %921 = vmatprep.subr.mxu0 %v694_v47  ;;  %954 = vmatprep.subr.mxu1 %v398_v4 }
  0x29   :  { %922 = vmatpush3.msra.mxu0 %v694_v47  ;;  %955 = vmatpush3.msra.mxu1 %v398_v4  ;;  %v724_v4 = vld [vmem:[%s1458_s3 + $0x130] sm:$0xff] }
  0x2a   :  { %923 = vmatprep.subr.mxu0 %v693_v48  ;;  %956 = vmatprep.subr.mxu1 %v397_v6 }
  0x2b   :  { %924 = vmatpush3.msra.mxu0 %v693_v48  ;;  %957 = vmatpush3.msra.mxu1 %v397_v6  ;;  %v722_v6 = vld [vmem:[%s1458_s3 + $0x120] sm:$0xff] }
  0x2c   :  { %925 = vmatprep.subr.mxu0 %v692_v49  ;;  %958 = vmatprep.subr.mxu1 %v396_v8 }
  0x2d   :  { %926 = vmatpush3.msra.mxu0 %v692_v49  ;;  %959 = vmatpush3.msra.mxu1 %v396_v8  ;;  %v720_v8 = vld [vmem:[%s1458_s3 + $0x110] sm:$0xff] }
  0x2e   :  { %927 = vmatprep.subr.mxu0 %v691_v50  ;;  %960 = vmatprep.subr.mxu1 %v395_v10 }
  0x2f   :  { %928 = vmatpush3.msra.mxu0 %v691_v50  ;;  %961 = vmatpush3.msra.mxu1 %v395_v10  ;;  %v718_v10 = vld [vmem:[%s1458_s3 + $0x100] sm:$0xff] }
  0x30   :  { %929 = vmatprep.subr.mxu0 %v690_v51  ;;  %962 = vmatprep.subr.mxu1 %v394_v12 }
  0x31   :  { %930 = vmatpush3.msra.mxu0 %v690_v51  ;;  %963 = vmatpush3.msra.mxu1 %v394_v12 }
  0x32   :  { %931 = vmatprep.subr.mxu0 %v689_v52  ;;  %964 = vmatprep.subr.mxu1 %v393_v14 }
  0x33   :  { %932 = vmatpush3.msra.mxu0 %v689_v52  ;;  %965 = vmatpush3.msra.mxu1 %v393_v14 }
  0x34   :  { %933 = vmatprep.subr.mxu0 %v688_v53  ;;  %966 = vmatprep.subr.mxu1 %v392_v16 }
  0x35   :  { %934 = vmatpush3.msra.mxu0 %v688_v53  ;;  %967 = vmatpush3.msra.mxu1 %v392_v16 }
  0x36   :  { %935 = vmatprep.subr.mxu0 %v687_v54  ;;  %968 = vmatprep.subr.mxu1 %v391_v18 }
  0x37   :  { %936 = vmatpush3.msra.mxu0 %v687_v54  ;;  %969 = vmatpush3.msra.mxu1 %v391_v18  ;;  %v736_v18 = vld [vmem:[%s1460_s4] ss:$0 sm:$0xff] }
  0x38   :  { %937 = vmatprep.subr.mxu0 %v686_v55  ;;  %970 = vmatprep.subr.mxu1 %v390_v20 }
  0x39   :  { %938 = vmatpush3.msra.mxu0 %v686_v55  ;;  %971 = vmatpush3.msra.mxu1 %v390_v20 }
  0x3a   :  { %939 = vmatprep.subr.mxu0 %v685_v56  ;;  %972 = vmatprep.subr.mxu1 %v389_v22 }
  0x3b   :  { %940 = vmatpush3.msra.mxu0 %v685_v56  ;;  %973 = vmatpush3.msra.mxu1 %v389_v22 }
  0x3c   :  { %941 = vmatprep.subr.mxu0 %v684_v57  ;;  %974 = vmatprep.subr.mxu1 %v388_v24 }
  0x3d   :  { %942 = vmatpush3.msra.mxu0 %v684_v57  ;;  %975 = vmatpush3.msra.mxu1 %v388_v24 }
  0x3e   :  { %943 = vmatprep.subr.mxu0 %v683_v59  ;;  %976 = vmatprep.subr.mxu1 %v387_v27 }
  0x3f   :  { %944 = vmatpush3.msra.mxu0 %v683_v59  ;;  %977 = vmatpush3.msra.mxu1 %v387_v27  ;;  %v732_v59 = vld [vmem:[%s1458_s3 + $0x170] sm:$0xff] }
  0x40   :  { %945 = vmatprep.subr.mxu0 %v682_v60  ;;  %978 = vmatprep.subr.mxu1 %v386_v31 }
  0x41   :  { %946 = vmatpush3.msra.mxu0 %v682_v60  ;;  %979 = vmatpush3.msra.mxu1 %v386_v31 }
  0x42   :  { %947 = vmatprep.subr.mxu0 %v681_v62  ;;  %980 = vmatprep.subr.mxu1 %v385_v33 }
  0x43   :  { %948 = vmatpush3.msra.mxu0 %v681_v62  ;;  %981 = vmatpush3.msra.mxu1 %v385_v33  ;;  %v729_v62 = vld [vmem:[%s1458_s3 + $0x158] sm:$0xff] }
  0x44   :  { %950 = vmatmul.mubr.msk.f32.vlgmr.msra.gmra.mxu0 %vm1275_vm3, %v64_v63  ;;  %987 = vmatprep.subr.mxu0 %v715_v1  ;;  %v728_v63 = vld [vmem:[%s1458_s3 + $0x150] sm:$0xff] }
  0x45   :  { %988 = vmatpush3.msra.mxu0 %v715_v1  ;;  %982 = vmatprep.subr.mxu1 %v384_v35  ;;  %v727_v1 = vld [vmem:[%s1458_s3 + $0x148] sm:$0xff] }
  0x46   :  { %989 = vmatprep.subr.mxu0 %v714_v3  ;;  %983 = vmatpush3.msra.mxu1 %v384_v35 }
  0x47   :  { %990 = vmatpush3.msra.mxu0 %v714_v3  ;;  %1022 = vmatprep.subr.mxu1 %v733_v36  ;;  %v725_v3 = vld [vmem:[%s1458_s3 + $0x138] sm:$0xff] }
  0x48   :  { %991 = vmatprep.subr.mxu0 %v713_v5 }
  0x49   :  { %992 = vmatpush3.msra.mxu0 %v713_v5  ;;  %v723_v5 = vld [vmem:[%s1458_s3 + $0x128] sm:$0xff] }
  0x4a   :  { %993 = vmatprep.subr.mxu0 %v712_v7 }
  0x4b   :  { %994 = vmatpush3.msra.mxu0 %v712_v7  ;;  %v721_v7 = vld [vmem:[%s1458_s3 + $0x118] sm:$0xff] }
  0x4c   :  { %995 = vmatprep.subr.mxu0 %v711_v9 }
  0x4d   :  { %996 = vmatpush3.msra.mxu0 %v711_v9  ;;  %v719_v9 = vld [vmem:[%s1458_s3 + $0x108] sm:$0xff] }
  0x4e   :  { %997 = vmatprep.subr.mxu0 %v710_v11 }
  0x4f   :  { %998 = vmatpush3.msra.mxu0 %v710_v11 }
  0x50   :  { %999 = vmatprep.subr.mxu0 %v709_v13 }
  0x51   :  { %1000 = vmatpush3.msra.mxu0 %v709_v13 }
  0x52   :  { %1001 = vmatprep.subr.mxu0 %v708_v15 }
  0x53   :  { %1002 = vmatpush3.msra.mxu0 %v708_v15 }
  0x54   :  { %1003 = vmatprep.subr.mxu0 %v707_v17 }
  0x55   :  { %1004 = vmatpush3.msra.mxu0 %v707_v17 }
  0x56   :  { %1005 = vmatprep.subr.mxu0 %v706_v19 }
  0x57   :  { %1006 = vmatpush3.msra.mxu0 %v706_v19 }
  0x58   :  { %1007 = vmatprep.subr.mxu0 %v705_v21 }
  0x59   :  { %1008 = vmatpush3.msra.mxu0 %v705_v21 }
  0x5a   :  { %1009 = vmatprep.subr.mxu0 %v704_v23 }
  0x5b   :  { %1010 = vmatpush3.msra.mxu0 %v704_v23 }
  0x5c   :  { %1011 = vmatprep.subr.mxu0 %v703_v25 }
  0x5d   :  { %1012 = vmatpush3.msra.mxu0 %v703_v25 }
  0x5e   :  { %1013 = vmatprep.subr.mxu0 %v702_v30 }
  0x5f   :  { %1014 = vmatpush3.msra.mxu0 %v702_v30 }
  0x60   :  { %1015 = vmatprep.subr.mxu0 %v701_v32 }
  0x61   :  { %1016 = vmatpush3.msra.mxu0 %v701_v32 }
  0x62   :  { %1017 = vmatprep.subr.mxu0 %v700_v34 }
  0x63   :  { %1018 = vmatpush3.msra.mxu0 %v700_v34 }
  0xe3   :  { %v881_v37 = vpop.f32.mrf.mxu0 }
  0xe4   :  { %v916_v38 = vpop.f32.mrf.mxu1 }
  0xe5   :  { %v166_v39 = vpop.f32.mrf.mxu0  ;;  %v247_v41 = vadd.f32 %v916_v38, %v881_v37 }
  0xe6   :  { %v241_v40 = vpop.f32.mrf.mxu1 }
  0xe7   :  { %v242_v45 = vadd.f32 %v241_v40, %v166_v39 }
 0x104   :  { %v951_v43 = vpop.f32.mrf.mxu0 }
 0x105   :  { %v343_v46 = vadd.f32 %v951_v43, %v247_v41 }
 0x106   :  { %v333_v47 = vpop.f32.mrf.mxu0 }
 0x107   :  { %v352_v48 = vadd.f32 %v699_v44, %v343_v46  ;;  %v342_v49 = vadd.f32 %v333_v47, %v242_v45 }
 0x109   :  { %v1383_v50 = vmax.f32 %v352_v48, 0.0  ;;  %v351_v51 = vadd.f32 %v699_v44, %v342_v49 }
 0x10b   :  { %v353_v52 = vmax.f32 %v351_v51, 0.0  ;;  %v356_v53 = vrot.slane %v1383_v50, 7  ;;  %v362_v58 = vrot.slane %v1383_v50, 1 }
 0x10d   :  { %v355_v54 = vrot.slane %v353_v52, 7  ;;  %1019 = vmatprep.mubr.f32.mxu0 %v353_v52  ;;  %v361_v55 = vrot.slane %v353_v52, 1 }
 0x10e   :  { %1020 = vmatmul.mubr.f32.vlgmr.msra.gmra.mxu0 %v1383_v50 }
 0x10f   :  { %v358_v56 = vsel %vm55_vm0, %v356_v53, %v355_v54  ;;  %v357_v57 = vsel %vm55_vm0, %v355_v54, %v356_v53  ;;  %v363_v60 = vsel %vm62_vm2, %v361_v55, %v362_v58  ;;  %v364_v11 = vsel %vm62_vm2, %v362_v58, %v361_v55 }
 0x110   :  { %984 = vmatprep.mubr.msk.f32.mxu1 %vm1203_vm1, %v358_v56 }
 0x111   :  { %985 = vmatmul.mubr.f32.vlgmr.msra.gmra.mxu1 %v357_v57 }
 0x112   :  { %1023 = vmatpush3.msra.mxu1 %v733_v36  ;;  %1054 = vmatprep.mubr.f32.mxu1 %v363_v60 }
 0x113   :  { %1024 = vmatprep.subr.mxu1 %v732_v59 }
 0x114   :  { %1025 = vmatpush3.msra.mxu1 %v732_v59 }
 0x115   :  { %1026 = vmatprep.subr.mxu1 %v731_v61 }
 0x116   :  { %1027 = vmatpush3.msra.mxu1 %v731_v61 }
 0x117   :  { %1028 = vmatprep.subr.mxu1 %v730_v42 }
 0x118   :  { %1029 = vmatpush3.msra.mxu1 %v730_v42 }
 0x119   :  { %1030 = vmatprep.subr.mxu1 %v729_v62 }
 0x11a   :  { %1031 = vmatpush3.msra.mxu1 %v729_v62 }
 0x11b   :  { %1032 = vmatprep.subr.mxu1 %v728_v63 }
 0x11c   :  { %1033 = vmatpush3.msra.mxu1 %v728_v63 }
 0x11d   :  { %1034 = vmatprep.subr.mxu1 %v727_v1 }
 0x11e   :  { %1035 = vmatpush3.msra.mxu1 %v727_v1 }
 0x11f   :  { %1036 = vmatprep.subr.mxu1 %v726_v2 }
 0x120   :  { %1037 = vmatpush3.msra.mxu1 %v726_v2 }
 0x121   :  { %1038 = vmatprep.subr.mxu1 %v725_v3 }
 0x122   :  { %1039 = vmatpush3.msra.mxu1 %v725_v3 }
 0x123   :  { %1040 = vmatprep.subr.mxu1 %v724_v4 }
 0x124   :  { %1041 = vmatpush3.msra.mxu1 %v724_v4 }
 0x125   :  { %1042 = vmatprep.subr.mxu1 %v723_v5 }
 0x126   :  { %1043 = vmatpush3.msra.mxu1 %v723_v5 }
 0x127   :  { %1044 = vmatprep.subr.mxu1 %v722_v6 }
 0x128   :  { %1045 = vmatpush3.msra.mxu1 %v722_v6 }
 0x129   :  { %1046 = vmatprep.subr.mxu1 %v721_v7 }
 0x12a   :  { %1047 = vmatpush3.msra.mxu1 %v721_v7 }
 0x12b   :  { %1048 = vmatprep.subr.mxu1 %v720_v8 }
 0x12c   :  { %1049 = vmatpush3.msra.mxu1 %v720_v8 }
 0x12d   :  { %1050 = vmatprep.subr.mxu1 %v719_v9 }
 0x12e   :  { %1051 = vmatpush3.msra.mxu1 %v719_v9 }
 0x12f   :  { %1052 = vmatprep.subr.mxu1 %v718_v10 }
 0x130   :  { %1053 = vmatpush3.msra.mxu1 %v718_v10 }
 0x131   :  { %1055 = vmatmul.mubr.msk.f32.vlgmr.msra.gmra.mxu1 %vm1275_vm3, %v364_v11 }
 0x1ce   :  { %v1021_v13 = vpop.f32.mrf.mxu0 }
 0x1d0   :  { %v541_v16 = vpop.f32.mrf.mxu0 }
 0x1d1   :  { %v986_v12 = vpop.f32.mrf.mxu1 }
 0x1d2   :  { %v547_v15 = vadd.f32 %v1021_v13, %v986_v12 }
 0x1d3   :  { %v466_v14 = vpop.f32.mrf.mxu1 }
 0x1d4   :  { %v542_v19 = vadd.f32 %v541_v16, %v466_v14 }
 0x1f1   :  { %v1056_v17 = vpop.f32.mrf.mxu1 }
 0x1f2   :  { %v643_v20 = vadd.f32 %v1056_v17, %v547_v15 }
 0x1f3   :  { %v633_v21 = vpop.f32.mrf.mxu1 }
 0x1f4   :  { %v652_v22 = vadd.f32 %v736_v18, %v643_v20  ;;  %v642_v23 = vadd.f32 %v633_v21, %v542_v19 }
 0x1f6   :  { %v654_v26 = vadd.f32 %v652_v22, %v1175_v29  ;;  %v651_v24 = vadd.f32 %v736_v18, %v642_v23 }
 0x1f8   :  { %v656_v0 = vmax.f32 %v654_v26, 0.0  ;;  %v653_v25 = vadd.f32 %v651_v24, %v1170_v28 }
 0x1fa   :  { %658 = vst [vmem:[%s1461_s5 + $0x8] sm:$0xff] %v656_v0  ;;  %v655_v27 = vmax.f32 %v653_v25, 0.0 }
 0x1fc   :  { %657 = vst [vmem:[%s1461_s5] sm:$0xff] %v655_v27 }

</bundles_post_ra>
